<compile_context>
chip_gen: v5e
topology: v5e:2x2
jax: 0.10.0
libtpu: 0.0.40
codegen_flags: <defaults>
</compile_context>

<pallas_src>
import functools

import jax
import jax.numpy as jnp
from jax import lax
from jax.experimental import pallas as pl
from jax.experimental.pallas import tpu as pltpu

N_EMBD = 128
HIDDEN = 4 * N_EMBD
DROPOUT_P = 0.1


def _round_up(x, m):
    return (x + m - 1) // m * m


def _ffn_kernel(seed_ref, x_ref, w1_ref, b1_ref, w2_ref, b2_ref, o_ref,
                *, training: bool):
    # First linear: bf16 inputs, f32 accumulation on the MXU.
    h = jnp.dot(x_ref[...], w1_ref[...], preferred_element_type=jnp.float32)
    h = jnp.maximum(h + b1_ref[...], 0.0)          # bias + ReLU in f32

    # Second linear.
    o = jnp.dot(h.astype(jnp.bfloat16), w2_ref[...],
                preferred_element_type=jnp.float32)
    o = o + b2_ref[...]

    if training:
        keep_prob = 1.0 - DROPOUT_P
        # NOTE: int(keep_prob * 2**32) overflows uint32 only for keep_prob=1.0
        # (dropout disabled); guard if DROPOUT_P ever becomes configurable.
        threshold = jnp.uint32(int(keep_prob * (2 ** 32)))
        tm = o.shape[0]
        rows = lax.broadcasted_iota(jnp.int32, o.shape, 0) + pl.program_id(0) * tm
        cols = lax.broadcasted_iota(jnp.int32, o.shape, 1)
        idx = (rows * N_EMBD + cols).astype(jnp.uint32)
        # murmur3-style fmix32 of (global element index, seed): cheap VPU work
        # hidden under MXU slack; independent of tiling / grid order.
        z = idx ^ (seed_ref[0].astype(jnp.uint32) * jnp.uint32(0x9E3779B9))
        z = (z ^ (z >> 16)) * jnp.uint32(0x85EBCA6B)
        z = (z ^ (z >> 13)) * jnp.uint32(0xC2B2AE35)
        z = z ^ (z >> 16)
        keep = z < threshold
        o = jnp.where(keep, o * (1.0 / keep_prob), 0.0)

    o_ref[...] = o.astype(o_ref.dtype)


def feed_forward(x, w1, b1, w2, b2, seed, *, training=True, tm=512):
    """x: (B, T, C) with C == 128.  Returns (B, T, C) in x.dtype."""
    B, T, C = x.shape
    assert C == N_EMBD
    M = B * T

    # Clamp the row tile for small inputs (multiple of 16 for bf16 sublane
    # packing) and pad M up to a multiple of the tile instead of forcing a
    # tiny tm for divisibility.
    tm = min(tm, _round_up(M, 16))
    M_pad = _round_up(M, tm)

    x2 = x.reshape(M, C)
    if M_pad != M:
        x2 = jnp.pad(x2, ((0, M_pad - M), (0, 0)))

    x_bf = x2.astype(jnp.bfloat16)
    w1_bf = w1.astype(jnp.bfloat16)
    w2_bf = w2.astype(jnp.bfloat16)
    b1_2d = b1.reshape(1, HIDDEN).astype(jnp.float32)
    b2_2d = b2.reshape(1, N_EMBD).astype(jnp.float32)
    seed_arr = jnp.asarray([seed], dtype=jnp.int32)

    kernel = functools.partial(_ffn_kernel, training=training)

    out = pl.pallas_call(
        kernel,
        out_shape=jax.ShapeDtypeStruct((M_pad, N_EMBD), x.dtype),
        grid_spec=pltpu.PrefetchScalarGridSpec(
            num_scalar_prefetch=1,
            grid=(M_pad // tm,),
            in_specs=[
                pl.BlockSpec((tm, N_EMBD), lambda i, seed: (i, 0)),       # x tile (bf16)
                pl.BlockSpec((N_EMBD, HIDDEN), lambda i, seed: (0, 0)),   # W1 (bf16)
                pl.BlockSpec((1, HIDDEN), lambda i, seed: (0, 0)),        # b1 (f32)
                pl.BlockSpec((HIDDEN, N_EMBD), lambda i, seed: (0, 0)),   # W2 (bf16)
                pl.BlockSpec((1, N_EMBD), lambda i, seed: (0, 0)),        # b2 (f32)
            ],
            out_specs=pl.BlockSpec((tm, N_EMBD), lambda i, seed: (i, 0)),
        ),
        compiler_params=pltpu.CompilerParams(
            # No carried state between grid steps -> parallel (uses both
            # TensorCores on v7x; harmless on v5e/v6e).
            dimension_semantics=("parallel",),
        ),
    )(seed_arr, x_bf, w1_bf, b1_2d, w2_bf, b2_2d)

    if M_pad != M:
        out = out[:M]
    return out.reshape(B, T, C)


def feed_forward_ref(x, w1, b1, w2, b2):
    # Pure-JAX reference (eval mode, dropout = identity), same bf16-input /
    # f32-accumulate numerics as the kernel.
    h = jnp.dot(x.astype(jnp.bfloat16), w1.astype(jnp.bfloat16),
                preferred_element_type=jnp.float32) + b1
    h = jnp.maximum(h, 0.0)
    return jnp.dot(h.astype(jnp.bfloat16), w2.astype(jnp.bfloat16),
                   preferred_element_type=jnp.float32) + b2


if __name__ == "__main__":
    key = jax.random.PRNGKey(0)
    kx, kw1, kb1, kw2, kb2 = jax.random.split(key, 5)

    B, T = 2, 8  # small shapes; B*T = 16 rows, C = 128
    x = jax.random.normal(kx, (B, T, N_EMBD), dtype=jnp.float32)

    # Deterministic parameter init (matches nn.Linear shapes).
    bound1 = 1.0 / (N_EMBD ** 0.5)
    bound2 = 1.0 / (HIDDEN ** 0.5)
    w1 = jax.random.uniform(kw1, (N_EMBD, HIDDEN), jnp.float32, -bound1, bound1)
    b1 = jax.random.uniform(kb1, (HIDDEN,), jnp.float32, -bound1, bound1)
    w2 = jax.random.uniform(kw2, (HIDDEN, N_EMBD), jnp.float32, -bound2, bound2)
    b2 = jax.random.uniform(kb2, (N_EMBD,), jnp.float32, -bound2, bound2)

    # Eval mode: check against the pure-JAX reference (same bf16/f32 numerics).
    y_eval = feed_forward(x, w1, b1, w2, b2, seed=0, training=False)
    y_eval = jax.block_until_ready(y_eval)
    y_ref = feed_forward_ref(x, w1, b1, w2, b2)
    assert y_eval.shape == (B, T, N_EMBD)
    assert jnp.allclose(y_eval, y_ref, atol=1e-2, rtol=1e-2)

    # Train mode: dropout active (RNG stream differs from PyTorch's, as any
    # non-torch implementation must).
    y_train = feed_forward(x, w1, b1, w2, b2, seed=1234, training=True)
    y_train = jax.block_until_ready(y_train)
    assert y_train.shape == (B, T, N_EMBD)
    assert bool(jnp.all(jnp.isfinite(y_train)))
    drop_frac = float(jnp.mean((y_train == 0.0).astype(jnp.float32)))
    assert 0.02 < drop_frac < 0.25, drop_frac  # ~10% expected

    print("KERNEL_OK")
</pallas_src>

<mosaic_0001>
module attributes {stable_mosaic.version = 11 : i64} {
  func.func @_ffn_kernel(%arg0: i32, %arg1: memref<1xi32, #tpu.memory_space<smem>>, %arg2: memref<16x128xbf16, #tpu.memory_space<vmem>>, %arg3: memref<128x512xbf16, #tpu.memory_space<vmem>>, %arg4: memref<1x512xf32, #tpu.memory_space<vmem>>, %arg5: memref<512x128xbf16, #tpu.memory_space<vmem>>, %arg6: memref<1x128xf32, #tpu.memory_space<vmem>>, %arg7: memref<16x128xf32, #tpu.memory_space<vmem>>) attributes {dimension_semantics = [#tpu.dimension_semantics<parallel>], iteration_bounds = array<i64: 1>, scalar_prefetch = 1 : i64, scratch_operands = 0 : i64, tpu.core_type = #tpu.core_type<tc>, window_params = [{transform_indices = @transform_0, window_bounds = array<i64: 16, 128>}, {pipeline_mode = #tpu.pipeline_mode<synchronous>, transform_indices = @transform_1, window_bounds = array<i64: 128, 512>}, {pipeline_mode = #tpu.pipeline_mode<synchronous>, transform_indices = @transform_2, window_bounds = array<i64: 1, 512>}, {pipeline_mode = #tpu.pipeline_mode<synchronous>, transform_indices = @transform_3, window_bounds = array<i64: 512, 128>}, {pipeline_mode = #tpu.pipeline_mode<synchronous>, transform_indices = @transform_4, window_bounds = array<i64: 1, 128>}, {transform_indices = @transform_5, window_bounds = array<i64: 16, 128>}]} {
    %c0 = arith.constant 0 : index
    %c0_0 = arith.constant 0 : index
    %0 = vector.load %arg2[%c0, %c0_0] : memref<16x128xbf16, #tpu.memory_space<vmem>>, vector<16x128xbf16>
    %c0_1 = arith.constant 0 : index
    %c0_2 = arith.constant 0 : index
    %1 = vector.load %arg3[%c0_1, %c0_2] : memref<128x512xbf16, #tpu.memory_space<vmem>>, vector<128x512xbf16>
    %cst = arith.constant dense<0.000000e+00> : vector<16x512xf32>
    %2 = tpu.matmul %0, %1, %cst {dimension_numbers = #tpu.dot_dimension_numbers<[1], [0], [0], [1], [0, 0, 1, 1], [], []>} : vector<16x128xbf16>, vector<128x512xbf16>, vector<16x512xf32> -> vector<16x512xf32>
    %c0_3 = arith.constant 0 : index
    %c0_4 = arith.constant 0 : index
    %3 = vector.load %arg4[%c0_3, %c0_4] : memref<1x512xf32, #tpu.memory_space<vmem>>, vector<1x512xf32>
    %4 = vector.broadcast %3 : vector<1x512xf32> to vector<16x512xf32>
    %5 = arith.addf %2, %4 : vector<16x512xf32>
    %cst_5 = arith.constant 0.000000e+00 : f32
    %6 = vector.broadcast %cst_5 : f32 to vector<16x512xf32>
    %7 = arith.maximumf %5, %6 : vector<16x512xf32>
    %8 = arith.truncf %7 : vector<16x512xf32> to vector<16x512xbf16>
    %c0_6 = arith.constant 0 : index
    %c0_7 = arith.constant 0 : index
    %9 = vector.load %arg5[%c0_6, %c0_7] : memref<512x128xbf16, #tpu.memory_space<vmem>>, vector<512x128xbf16>
    %cst_8 = arith.constant dense<0.000000e+00> : vector<16x128xf32>
    %10 = tpu.matmul %8, %9, %cst_8 {dimension_numbers = #tpu.dot_dimension_numbers<[1], [0], [0], [1], [0, 0, 1, 1], [], []>} : vector<16x512xbf16>, vector<512x128xbf16>, vector<16x128xf32> -> vector<16x128xf32>
    %c0_9 = arith.constant 0 : index
    %c0_10 = arith.constant 0 : index
    %11 = vector.load %arg6[%c0_9, %c0_10] : memref<1x128xf32, #tpu.memory_space<vmem>>, vector<1x128xf32>
    %12 = vector.broadcast %11 : vector<1x128xf32> to vector<16x128xf32>
    %13 = arith.addf %10, %12 : vector<16x128xf32>
    %c0_11 = arith.constant 0 : index
    %c0_12 = arith.constant 0 : index
    %14 = vector.load %arg7[%c0_11, %c0_12] : memref<16x128xf32, #tpu.memory_space<vmem>>, vector<16x128xf32>
    tpu.vector_store %arg7[%c0_11, %c0_12], %13 {strides = array<i32>} : memref<16x128xf32, #tpu.memory_space<vmem>>, vector<16x128xf32>,
    return
  }
  func.func @transform_0(%arg0: i32, %arg1: memref<1xi32, #tpu.memory_space<smem>>) -> (i32, i32) {
    %c0_i32 = arith.constant 0 : i32
    %c0_i32_0 = arith.constant 0 : i32
    return %arg0, %c0_i32 : i32, i32
  }
  func.func @transform_1(%arg0: i32, %arg1: memref<1xi32, #tpu.memory_space<smem>>) -> (i32, i32) {
    %c0_i32 = arith.constant 0 : i32
    %c0_i32_0 = arith.constant 0 : i32
    %c0_i32_1 = arith.constant 0 : i32
    return %c0_i32, %c0_i32_0 : i32, i32
  }
  func.func @transform_2(%arg0: i32, %arg1: memref<1xi32, #tpu.memory_space<smem>>) -> (i32, i32) {
    %c0_i32 = arith.constant 0 : i32
    %c0_i32_0 = arith.constant 0 : i32
    %c0_i32_1 = arith.constant 0 : i32
    return %c0_i32, %c0_i32_0 : i32, i32
  }
  func.func @transform_3(%arg0: i32, %arg1: memref<1xi32, #tpu.memory_space<smem>>) -> (i32, i32) {
    %c0_i32 = arith.constant 0 : i32
    %c0_i32_0 = arith.constant 0 : i32
    %c0_i32_1 = arith.constant 0 : i32
    return %c0_i32, %c0_i32_0 : i32, i32
  }
  func.func @transform_4(%arg0: i32, %arg1: memref<1xi32, #tpu.memory_space<smem>>) -> (i32, i32) {
    %c0_i32 = arith.constant 0 : i32
    %c0_i32_0 = arith.constant 0 : i32
    %c0_i32_1 = arith.constant 0 : i32
    return %c0_i32, %c0_i32_0 : i32, i32
  }
  func.func @transform_5(%arg0: i32, %arg1: memref<1xi32, #tpu.memory_space<smem>>) -> (i32, i32) {
    %c0_i32 = arith.constant 0 : i32
    %c0_i32_0 = arith.constant 0 : i32
    return %arg0, %c0_i32 : i32, i32
  }
}

</mosaic_0001>

<bundles_post_ra>
// kernel: tpu_custom_call.1
= control target key start
LH: loop header
LB: loop body
LE: loop exit
PB: predicated region body
PF: predicated region fallthrough
CT: control target
= control target key end

     0   :  { %12 = vsyncpa [#allocation5], 0  ;;  %s1230_s0 = inlined_call_operand.<no memory space> [shape: s32[1], index: 0, kind: input, shape index: {}]   ;;  %s1231_s1 = inlined_call_operand.hbm [shape: bf16[16,128], index: 1, kind: input, shape index: {}]   ;;  %s1232_s2 = inlined_call_operand.hbm [shape: bf16[128,512], index: 2, kind: input, shape index: {}]   ;;  %s1233_s3 = inlined_call_operand.hbm [shape: f32[1,512], index: 3, kind: input, shape index: {}]   ;;  %s1234_s4 = inlined_call_operand.hbm [shape: bf16[512,128], index: 4, kind: input, shape index: {}]   ;;  %s1235_s5 = inlined_call_operand.vmem [shape: f32[1,128], index: 5, kind: input, shape index: {}]   ;;  %s1236_s6 = inlined_call_operand.hbm [shape: f32[16,128], index: 6, kind: output, shape index: {}]  }
   0x1   :  { %13 = vsyncpa [#allocation8], 0 }
   0x2   :  { %14 = vsyncpa [#allocation11], 0  ;;  %s33_s22 = sshll.u32 %s1232_s2, 4  ;;  %s34_s22 = int_to_ptr.hbm [resolvable:$true] %s33_s22 }
   0x3   :  { %15 = vsyncpa [#allocation6], 0  ;;  %s1166_s23 = smov [#allocation7]   ;;  %s20_s27 = sshll.u32 %s1231_s1, 4  ;;  %s21_s27 = int_to_ptr.hbm [resolvable:$true] %s20_s27 }
   0x4   :  { %s35_s24 = sshll.u32 %s1166_s23, 4  ;;  %s1167_s28 = smov 256   ;;  %s36_s24 = int_to_ptr.vmem [resolvable:$true] %s35_s24 }
   0x5   :  { %s1168_s29 = smov 16   ;;  %s1169_s30 = smov [#allocation4]  }
   0x6   :  { %41 = dma.hbm_to_vmem [thread:$0]  %s34_s22, 4096, %s36_s24, [#allocation8], %s1167_s28, %s1167_s28, %s1168_s29  }
   0x7   :  { %s22_s7 = sshll.u32 %s1169_s30, 4  ;;  %s1170_s8 = smov 64   ;;  %s23_s7 = int_to_ptr.vmem [resolvable:$true] %s22_s7 }
   0x8   :  { %s1171_s9 = smov 4   ;;  %s47_s11 = sshll.u32 %s1233_s3, 4  ;;  %s48_s11 = int_to_ptr.hbm [resolvable:$true] %s47_s11 }
   0x9   :  { %28 = dma.hbm_to_vmem [thread:$0]  %s21_s27, 128, %s23_s7, [#allocation5], %s1170_s8, %s1170_s8, %s1171_s9  }
   0xa   :  { %s1172_s12 = smov [#allocation9]   ;;  %s57_s15 = sshll.u32 %s1234_s4, 4  ;;  %s58_s15 = int_to_ptr.hbm [resolvable:$true] %s57_s15 }
   0xb   :  { %s49_s13 = sshll.u32 %s1172_s12, 4  ;;  %s1173_s16 = smov [#allocation10]   ;;  %s50_s13 = int_to_ptr.vmem [resolvable:$true] %s49_s13 }
   0xc   :  { %52 = dma.hbm_to_vmem [thread:$0]  %s48_s11, 64, %s50_s13, [#allocation8]  }
   0xd   :  { %s59_s17 = sshll.u32 %s1173_s16, 4  ;;  %s60_s17 = int_to_ptr.vmem [resolvable:$true] %s59_s17 }
   0xe   :  { %65 = dma.hbm_to_vmem [thread:$0]  %s58_s15, 4096, %s60_s17, [#allocation11], %s1170_s8, %s1170_s8, %s1171_s9  }
   0xf   :  { %1158 = dma.done.wait [#allocation5], 128  }
  0x10   :  { %1159 = vsyncadd [#allocation5], 4294967168 }
  0x11   :  { %1160 = dma.done.wait [#allocation8], 4160  }
  0x12   :  { %1161 = vsyncadd [#allocation8], 4294963136 }
  0x13   :  { %1162 = dma.done.wait [#allocation11], 4096  }
  0x14   :  { %1163 = vsyncadd [#allocation11], 4294963200  ;;  %v819_v0 = vld [vmem:[#allocation7 + $0xe0] sm:$0xf]  ;;  %v992_v1 = vld [vmem:[#allocation7 + $0xec] sm:$0xf0] }
  0x15   :  { %v990_v2 = vld [vmem:[#allocation7 + $0xe4] sm:$0xf]  ;;  %v820_v3 = vor.u32 %v992_v1, %v819_v0  ;;  %v821_v4 = vld [vmem:[#allocation7 + $0xf0] sm:$0xf0]  ;;  %v827_v5 = vld [vmem:[#allocation7 + $0xe8] sm:$0xf] }
  0x16   :  { %v993_v6 = vld [vmem:[#allocation7 + $0xf4] sm:$0xf0]  ;;  %v824_v7 = vor.u32 %v990_v2, %v821_v4  ;;  %v991_v9 = vld [vmem:[#allocation7 + $0xec] sm:$0xf]  ;;  %v829_v10 = vld [vmem:[#allocation7 + $0xf8] sm:$0xf0] }
  0x17   :  { %v828_v8 = vor.u32 %v993_v6, %v827_v5  ;;  %v803_v11 = vld [vmem:[#allocation7 + $0xc0] sm:$0xf]  ;;  %294 = vmatpush.bf16.msra.mxu0 %v820_v3  ;;  %v832_v12 = vor.u32 %v991_v9, %v829_v10  ;;  %v988_v13 = vld [vmem:[#allocation7 + $0xcc] sm:$0xf0]  ;;  %v986_v14 = vld [vmem:[#allocation7 + $0xc4] sm:$0xf] }
  0x18   :  { %v805_v15 = vld [vmem:[#allocation7 + $0xd0] sm:$0xf0]  ;;  %308 = vmatpush.bf16.msra.mxu1 %v824_v7  ;;  %v804_v16 = vor.u32 %v988_v13, %v803_v11  ;;  %v811_v18 = vld [vmem:[#allocation7 + $0xc8] sm:$0xf]  ;;  %v989_v19 = vld [vmem:[#allocation7 + $0xd4] sm:$0xf0] }
  0x19   :  { %322 = vmatpush.bf16.msra.mxu2 %v828_v8  ;;  %v808_v17 = vor.u32 %v986_v14, %v805_v15  ;;  %v987_v20 = vld [vmem:[#allocation7 + $0xcc] sm:$0xf]  ;;  %336 = vmatpush.bf16.msra.mxu3 %v832_v12  ;;  %v812_v21 = vor.u32 %v989_v19, %v811_v18  ;;  %v813_v22 = vld [vmem:[#allocation7 + $0xd8] sm:$0xf0]  ;;  %v787_v23 = vld [vmem:[#allocation7 + $0xa0] sm:$0xf] }
  0x1a   :  { %v984_v24 = vld [vmem:[#allocation7 + $0xac] sm:$0xf0]  ;;  %v816_v25 = vor.u32 %v987_v20, %v813_v22  ;;  %v982_v26 = vld [vmem:[#allocation7 + $0xa4] sm:$0xf]  ;;  %v789_v27 = vld [vmem:[#allocation7 + $0xb0] sm:$0xf0] }
  0x1b   :  { %v795_v28 = vld [vmem:[#allocation7 + $0xa8] sm:$0xf]  ;;  %295 = vmatpush.bf16.msra.mxu0 %v804_v16  ;;  %v788_v29 = vor.u32 %v984_v24, %v787_v23  ;;  %v985_v30 = vld [vmem:[#allocation7 + $0xb4] sm:$0xf0]  ;;  %v983_v31 = vld [vmem:[#allocation7 + $0xac] sm:$0xf]  ;;  %v792_v33 = vor.u32 %v982_v26, %v789_v27 }
  0x1c   :  { %v797_v32 = vld [vmem:[#allocation7 + $0xb8] sm:$0xf0]  ;;  %309 = vmatpush.bf16.msra.mxu1 %v808_v17  ;;  %v796_v34 = vor.u32 %v985_v30, %v795_v28  ;;  %v771_v35 = vld [vmem:[#allocation7 + $0x80] sm:$0xf]  ;;  %v980_v36 = vld [vmem:[#allocation7 + $0x8c] sm:$0xf0] }
  0x1d   :  { %323 = vmatpush.bf16.msra.mxu2 %v812_v21  ;;  %v978_v37 = vld [vmem:[#allocation7 + $0x84] sm:$0xf]  ;;  %337 = vmatpush.bf16.msra.mxu3 %v816_v25  ;;  %v800_v38 = vor.u32 %v983_v31, %v797_v32  ;;  %v773_v39 = vld [vmem:[#allocation7 + $0x90] sm:$0xf0]  ;;  %v779_v40 = vld [vmem:[#allocation7 + $0x88] sm:$0xf]  ;;  %v772_v44 = vor.u32 %v980_v36, %v771_v35 }
  0x1e   :  { %v981_v41 = vld [vmem:[#allocation7 + $0x94] sm:$0xf0]  ;;  %v979_v42 = vld [vmem:[#allocation7 + $0x8c] sm:$0xf]  ;;  %v781_v43 = vld [vmem:[#allocation7 + $0x98] sm:$0xf0]  ;;  %v776_v45 = vor.u32 %v978_v37, %v773_v39 }
  0x1f   :  { %296 = vmatpush.bf16.msra.mxu0 %v788_v29  ;;  %v780_v46 = vor.u32 %v981_v41, %v779_v40  ;;  %v755_v47 = vld [vmem:[#allocation7 + $0x60] sm:$0xf]  ;;  %v976_v48 = vld [vmem:[#allocation7 + $0x6c] sm:$0xf0]  ;;  %v974_v49 = vld [vmem:[#allocation7 + $0x64] sm:$0xf]  ;;  %v784_v50 = vor.u32 %v979_v42, %v781_v43 }
  0x20   :  { %310 = vmatpush.bf16.msra.mxu1 %v792_v33  ;;  %v757_v51 = vld [vmem:[#allocation7 + $0x70] sm:$0xf0]  ;;  %v763_v52 = vld [vmem:[#allocation7 + $0x68] sm:$0xf]  ;;  %v977_v53 = vld [vmem:[#allocation7 + $0x74] sm:$0xf0]  ;;  %v756_v56 = vor.u32 %v976_v48, %v755_v47 }
  0x21   :  { %324 = vmatpush.bf16.msra.mxu2 %v796_v34  ;;  %338 = vmatpush.bf16.msra.mxu3 %v800_v38  ;;  %v975_v54 = vld [vmem:[#allocation7 + $0x6c] sm:$0xf]  ;;  %v765_v55 = vld [vmem:[#allocation7 + $0x78] sm:$0xf0]  ;;  %v760_v57 = vor.u32 %v974_v49, %v757_v51  ;;  %v764_v58 = vor.u32 %v977_v53, %v763_v52  ;;  %v739_v59 = vld [vmem:[#allocation7 + $0x40] sm:$0xf] }
  0x22   :  { %v972_v60 = vld [vmem:[#allocation7 + $0x4c] sm:$0xf0]  ;;  %v970_v61 = vld [vmem:[#allocation7 + $0x44] sm:$0xf]  ;;  %v768_v62 = vor.u32 %v975_v54, %v765_v55  ;;  %v741_v63 = vld [vmem:[#allocation7 + $0x50] sm:$0xf0] }
  0x23   :  { %297 = vmatpush.bf16.msra.mxu0 %v772_v44  ;;  %v747_v0 = vld [vmem:[#allocation7 + $0x48] sm:$0xf]  ;;  %v973_v1 = vld [vmem:[#allocation7 + $0x54] sm:$0xf0]  ;;  %v971_v2 = vld [vmem:[#allocation7 + $0x4c] sm:$0xf]  ;;  %v740_v4 = vor.u32 %v972_v60, %v739_v59  ;;  %v744_v5 = vor.u32 %v970_v61, %v741_v63 }
  0x24   :  { %311 = vmatpush.bf16.msra.mxu1 %v776_v45  ;;  %v749_v3 = vld [vmem:[#allocation7 + $0x58] sm:$0xf0]  ;;  %v748_v6 = vor.u32 %v973_v1, %v747_v0  ;;  %v723_v7 = vld [vmem:[#allocation7 + $0x20] sm:$0xf]  ;;  %v968_v8 = vld [vmem:[#allocation7 + $0x2c] sm:$0xf0] }
  0x25   :  { %325 = vmatpush.bf16.msra.mxu2 %v780_v46  ;;  %339 = vmatpush.bf16.msra.mxu3 %v784_v50  ;;  %v966_v9 = vld [vmem:[#allocation7 + $0x24] sm:$0xf]  ;;  %v752_v10 = vor.u32 %v971_v2, %v749_v3  ;;  %v725_v11 = vld [vmem:[#allocation7 + $0x30] sm:$0xf0]  ;;  %v731_v12 = vld [vmem:[#allocation7 + $0x28] sm:$0xf]  ;;  %v724_v16 = vor.u32 %v968_v8, %v723_v7 }
  0x26   :  { %v969_v13 = vld [vmem:[#allocation7 + $0x34] sm:$0xf0]  ;;  %v967_v14 = vld [vmem:[#allocation7 + $0x2c] sm:$0xf]  ;;  %v733_v15 = vld [vmem:[#allocation7 + $0x38] sm:$0xf0]  ;;  %v728_v17 = vor.u32 %v966_v9, %v725_v11 }
  0x27   :  { %298 = vmatpush.bf16.msra.mxu0 %v756_v56  ;;  %v732_v18 = vor.u32 %v969_v13, %v731_v12  ;;  %v707_v19 = vld [vmem:[#allocation7] sm:$0xf]  ;;  %v964_v20 = vld [vmem:[#allocation7 + $0xc] sm:$0xf0]  ;;  %v962_v21 = vld [vmem:[#allocation7 + $0x4] sm:$0xf]  ;;  %v736_v22 = vor.u32 %v967_v14, %v733_v15 }
  0x28   :  { %312 = vmatpush.bf16.msra.mxu1 %v760_v57  ;;  %v709_v23 = vld [vmem:[#allocation7 + $0x10] sm:$0xf0]  ;;  %v715_v24 = vld [vmem:[#allocation7 + $0x8] sm:$0xf]  ;;  %v965_v25 = vld [vmem:[#allocation7 + $0x14] sm:$0xf0]  ;;  %v708_v28 = vor.u32 %v964_v20, %v707_v19 }
  0x29   :  { %326 = vmatpush.bf16.msra.mxu2 %v764_v58  ;;  %340 = vmatpush.bf16.msra.mxu3 %v768_v62  ;;  %v963_v26 = vld [vmem:[#allocation7 + $0xc] sm:$0xf]  ;;  %v717_v27 = vld [vmem:[#allocation7 + $0x18] sm:$0xf0]  ;;  %v712_v29 = vor.u32 %v962_v21, %v709_v23  ;;  %v716_v30 = vor.u32 %v965_v25, %v715_v24  ;;  %v1000_v36 = vld [vmem:[#allocation10 + $0x30] sm:$0xff]  ;;  %s1174_s18 = smov [#allocation12]  }
  0x2a   :  { %v720_v31 = vor.u32 %v963_v26, %v717_v27  ;;  %v1001_v32 = vld [vmem:[#allocation10 + $0x38] sm:$0xff]  ;;  %v1008_v38 = vld [vmem:[#allocation10 + $0x70] sm:$0xff]  ;;  %v999_v40 = vld [vmem:[#allocation10 + $0x28] sm:$0xff]  ;;  %s684_s19 = sshll.u32 %s1174_s18, 4  ;;  %s686_s21 = sshll.u32 %s1236_s6, 4  ;;  %s685_s19 = int_to_ptr.vmem [resolvable:$true] %s684_s19  ;;  %s687_s21 = int_to_ptr.hbm [resolvable:$true] %s686_s21 }
  0x2b   :  { %299 = vmatpush.bf16.msra.mxu0 %v740_v4  ;;  %v961_v33 = vld [vmem:[#allocation4] sm:$0xff]  ;;  %v1007_v42 = vld [vmem:[#allocation10 + $0x68] sm:$0xff]  ;;  %v998_v44 = vld [vmem:[#allocation10 + $0x20] sm:$0xff]  ;;  %s1176_s22 = smov 8  }
  0x2c   :  { %313 = vmatpush.bf16.msra.mxu1 %v744_v5  ;;  %v1009_v34 = vld [vmem:[#allocation10 + $0x78] sm:$0xff]  ;;  %v1016_v39 = vld [vmem:[#allocation10 + $0xb0] sm:$0xff]  ;;  %v1015_v43 = vld [vmem:[#allocation10 + $0xa8] sm:$0xff] }
  0x2d   :  { %327 = vmatpush.bf16.msra.mxu2 %v748_v6  ;;  %341 = vmatpush.bf16.msra.mxu3 %v752_v10  ;;  %v1017_v35 = vld [vmem:[#allocation10 + $0xb8] sm:$0xff]  ;;  %v1024_v41 = vld [vmem:[#allocation10 + $0xf0] sm:$0xff]  ;;  %v1023_v45 = vld [vmem:[#allocation10 + $0xe8] sm:$0xff] }
  0x2e   :  { %v1025_v37 = vld [vmem:[#allocation10 + $0xf8] sm:$0xff]  ;;  %v1006_v46 = vld [vmem:[#allocation10 + $0x60] sm:$0xff]  ;;  %v996_v51 = vld [vmem:[#allocation10 + $0x10] sm:$0xff] }
  0x2f   :  { %300 = vmatpush.bf16.msra.mxu0 %v724_v16  ;;  %v997_v47 = vld [vmem:[#allocation10 + $0x18] sm:$0xff]  ;;  %v1014_v49 = vld [vmem:[#allocation10 + $0xa0] sm:$0xff]  ;;  %v1004_v52 = vld [vmem:[#allocation10 + $0x50] sm:$0xff] }
  0x30   :  { %314 = vmatpush.bf16.msra.mxu1 %v728_v17  ;;  %v1005_v48 = vld [vmem:[#allocation10 + $0x58] sm:$0xff]  ;;  %v1022_v50 = vld [vmem:[#allocation10 + $0xe0] sm:$0xff]  ;;  %v995_v55 = vld [vmem:[#allocation10 + $0x8] sm:$0xff] }
  0x31   :  { %328 = vmatpush.bf16.msra.mxu2 %v732_v18  ;;  %342 = vmatpush.bf16.msra.mxu3 %v736_v22  ;;  %v1013_v53 = vld [vmem:[#allocation10 + $0x98] sm:$0xff]  ;;  %v1003_v56 = vld [vmem:[#allocation10 + $0x48] sm:$0xff]  ;;  %v1012_v57 = vld [vmem:[#allocation10 + $0x90] sm:$0xff] }
  0x32   :  { %v1021_v54 = vld [vmem:[#allocation10 + $0xd8] sm:$0xff]  ;;  %v1020_v58 = vld [vmem:[#allocation10 + $0xd0] sm:$0xff]  ;;  %v994_v59 = vld [vmem:[#allocation10] sm:$0xff] }
  0x33   :  { %301 = vmatpush.bf16.msra.mxu0 %v708_v28  ;;  %v1002_v60 = vld [vmem:[#allocation10 + $0x40] sm:$0xff]  ;;  %v1011_v61 = vld [vmem:[#allocation10 + $0x88] sm:$0xff]  ;;  %v118_v1 = vld [vmem:[#allocation9] sm:$0xf] }
  0x34   :  { %315 = vmatpush.bf16.msra.mxu1 %v712_v29  ;;  %v1019_v62 = vld [vmem:[#allocation10 + $0xc8] sm:$0xff]  ;;  %v1010_v63 = vld [vmem:[#allocation10 + $0x80] sm:$0xff]  ;;  %v120_v3 = vperm.slane %v118_v1, 0  ;;  %v121_v5 = vperm.slane %v118_v1, 1  ;;  %v122_v15 = vperm.slane %v118_v1, 2  ;;  %v123_v17 = vperm.slane %v118_v1, 3 }
  0x35   :  { %329 = vmatpush.bf16.msra.mxu2 %v716_v30  ;;  %343 = vmatpush.bf16.msra.mxu3 %v720_v31  ;;  %v1018_v0 = vld [vmem:[#allocation10 + $0xc0] sm:$0xff] }
  0x36   :  { %302 = vmatmul.bf16.vlgmr.msra.gmra.mxu0 %v961_v33 }
  0x37   :  { %622 = vmatpush.bf16.msrb.mxu0 %v1001_v32  ;;  %316 = vmatmul.bf16.vlgmr.msra.gmra.mxu1 %v961_v33 }
  0x38   :  { %636 = vmatpush.bf16.msrb.mxu1 %v1009_v34  ;;  %330 = vmatmul.bf16.vlgmr.msra.gmra.mxu2 %v961_v33 }
  0x39   :  { %344 = vmatmul.bf16.vlgmr.msra.gmra.mxu3 %v961_v33  ;;  %650 = vmatpush.bf16.msrb.mxu2 %v1017_v35  ;;  %v1037_v35 = vld [vmem:[%s1235_s5] ss:$0 sm:$0xff]  ;;  %s1175_s5 = smov 128  }
  0x3a   :  { %664 = vmatpush.bf16.msrb.mxu3 %v1025_v37 }
  0x3b   :  { %623 = vmatpush.bf16.msrb.mxu0 %v1000_v36 }
  0x3c   :  { %637 = vmatpush.bf16.msrb.mxu1 %v1008_v38 }
  0x3d   :  { %651 = vmatpush.bf16.msrb.mxu2 %v1016_v39 }
  0x3e   :  { %665 = vmatpush.bf16.msrb.mxu3 %v1024_v41 }
  0x3f   :  { %624 = vmatpush.bf16.msrb.mxu0 %v999_v40 }
  0x40   :  { %638 = vmatpush.bf16.msrb.mxu1 %v1007_v42 }
  0x41   :  { %652 = vmatpush.bf16.msrb.mxu2 %v1015_v43 }
  0x42   :  { %666 = vmatpush.bf16.msrb.mxu3 %v1023_v45 }
  0x43   :  { %625 = vmatpush.bf16.msrb.mxu0 %v998_v44 }
  0x44   :  { %639 = vmatpush.bf16.msrb.mxu1 %v1006_v46 }
  0x45   :  { %653 = vmatpush.bf16.msrb.mxu2 %v1014_v49 }
  0x46   :  { %667 = vmatpush.bf16.msrb.mxu3 %v1022_v50 }
  0x47   :  { %626 = vmatpush.bf16.msrb.mxu0 %v997_v47 }
  0x48   :  { %640 = vmatpush.bf16.msrb.mxu1 %v1005_v48 }
  0x49   :  { %654 = vmatpush.bf16.msrb.mxu2 %v1013_v53 }
  0x4a   :  { %668 = vmatpush.bf16.msrb.mxu3 %v1021_v54 }
  0x4b   :  { %627 = vmatpush.bf16.msrb.mxu0 %v996_v51 }
  0x4c   :  { %641 = vmatpush.bf16.msrb.mxu1 %v1004_v52 }
  0x4d   :  { %655 = vmatpush.bf16.msrb.mxu2 %v1012_v57 }
  0x4e   :  { %669 = vmatpush.bf16.msrb.mxu3 %v1020_v58 }
  0x4f   :  { %628 = vmatpush.bf16.msrb.mxu0 %v995_v55 }
  0x50   :  { %642 = vmatpush.bf16.msrb.mxu1 %v1003_v56 }
  0x51   :  { %656 = vmatpush.bf16.msrb.mxu2 %v1011_v61 }
  0x52   :  { %670 = vmatpush.bf16.msrb.mxu3 %v1019_v62 }
  0x53   :  { %629 = vmatpush.bf16.msrb.mxu0 %v994_v59 }
  0x54   :  { %643 = vmatpush.bf16.msrb.mxu1 %v1002_v60 }
  0x55   :  { %657 = vmatpush.bf16.msrb.mxu2 %v1010_v63 }
  0x56   :  { %671 = vmatpush.bf16.msrb.mxu3 %v1018_v0 }
  0xb3   :  { %v303_v2 = vpop.f32.mrf.mxu0 }
  0xb4   :  { %v317_v4 = vpop.f32.mrf.mxu1  ;;  %v304_v6 = vadd.f32 %v303_v2, %v120_v3 }
  0xb5   :  { %v318_v7 = vadd.f32 %v317_v4, %v121_v5 }
  0xb6   :  { %v350_v11 = vmax.f32 %v304_v6, 0.0 }
  0xb7   :  { %v351_v14 = vmax.f32 %v318_v7, 0.0 }
  0xbb   :  { %v331_v8 = vpop.f32.mrf.mxu2  ;;  %v305_v10 = vpop.f32.mrf.mxu0 }
  0xbc   :  { %v345_v9 = vpop.f32.mrf.mxu3  ;;  %v306_v12 = vadd.f32 %v305_v10, %v120_v3  ;;  %v319_v13 = vpop.f32.mrf.mxu1  ;;  %v332_v21 = vadd.f32 %v331_v8, %v122_v15 }
  0xbd   :  { %v320_v16 = vadd.f32 %v319_v13, %v121_v5  ;;  %v346_v23 = vadd.f32 %v345_v9, %v123_v17 }
  0xbe   :  { %v354_v18 = vmax.f32 %v306_v12, 0.0  ;;  %v352_v28 = vmax.f32 %v332_v21, 0.0 }
  0xbf   :  { %v355_v19 = vmax.f32 %v320_v16, 0.0  ;;  %v353_v30 = vmax.f32 %v346_v23, 0.0 }
  0xc0   :  { %v358_v20 = vpack.c.bf16 %v354_v18, %v350_v11 }
  0xc1   :  { %v359_v22 = vpack.c.bf16 %v355_v19, %v351_v14 }
  0xc2   :  { %630 = vmatmul.bf16.vlgmr.msrb.gmra.mxu0 %v358_v20 }
  0xc3   :  { %v333_v24 = vpop.f32.mrf.mxu2  ;;  %644 = vmatmul.bf16.vlgmr.msrb.gmra.mxu1 %v359_v22 }
  0xc4   :  { %v334_v25 = vadd.f32 %v333_v24, %v122_v15  ;;  %v347_v26 = vpop.f32.mrf.mxu3 }
  0xc5   :  { %v348_v27 = vadd.f32 %v347_v26, %v123_v17 }
  0xc6   :  { %v356_v29 = vmax.f32 %v334_v25, 0.0 }
  0xc7   :  { %v357_v31 = vmax.f32 %v348_v27, 0.0 }
  0xc8   :  { %v360_v32 = vpack.c.bf16 %v356_v29, %v352_v28 }
  0xc9   :  { %v361_v33 = vpack.c.bf16 %v357_v31, %v353_v30 }
  0xca   :  { %658 = vmatmul.bf16.vlgmr.msrb.gmra.mxu2 %v360_v32 }
  0xcb   :  { %672 = vmatmul.bf16.vlgmr.msrb.gmra.mxu3 %v361_v33 }
 0x13f   :  { %v631_v34 = vpop.f32.mrf.mxu0 }
 0x140   :  { %v632_v36 = vadd.f32 %v1037_v35, %v631_v34  ;;  %v645_v37 = vpop.f32.mrf.mxu1 }
 0x142   :  { %v646_v38 = vadd.f32 %v645_v37, %v632_v36 }
 0x147   :  { %v633_v39 = vpop.f32.mrf.mxu0 }
 0x148   :  { %v634_v43 = vadd.f32 %v1037_v35, %v633_v39  ;;  %v647_v45 = vpop.f32.mrf.mxu1 }
 0x14a   :  { %v648_v46 = vadd.f32 %v647_v45, %v634_v43 }
 0x14d   :  { %v659_v40 = vpop.f32.mrf.mxu2 }
 0x14e   :  { %v660_v41 = vadd.f32 %v659_v40, %v646_v38  ;;  %v673_v42 = vpop.f32.mrf.mxu3 }
 0x150   :  { %v674_v44 = vadd.f32 %v673_v42, %v660_v41 }
 0x152   :  { %678 = vst [vmem:[#allocation12] sm:$0xff] %v674_v44 }
 0x155   :  { %v661_v47 = vpop.f32.mrf.mxu2 }
 0x156   :  { %v662_v48 = vadd.f32 %v661_v47, %v648_v46  ;;  %v675_v49 = vpop.f32.mrf.mxu3 }
 0x158   :  { %v676_v50 = vadd.f32 %v675_v49, %v662_v48 }
 0x15a   :  { %679 = vst [vmem:[#allocation12 + $0x8] sm:$0xff] %v676_v50 }
 0x15b   :  { %692 = dma.vmem_to_hbm [thread:$0]  %s685_s19, 256, %s687_s21, [#allocation6], %s1175_s5, %s1175_s5, %s1176_s22  }
 0x15c   :  { %1164 = dma.done.wait [#allocation6], 256  }
 0x15d   :  { %1165 = vsyncadd [#allocation6], 4294967040 }
 0x15e   :  { %697 = vsyncpa [#allocation5], 1 }
 0x15f   :  { %698 = vsyncpa [#allocation8], 1 }
 0x160   :  { %699 = vsyncpa [#allocation11], 1 }
 0x161   :  { %700 = vsyncpa [#allocation6], 1 }

</bundles_post_ra>
